<compile_context>
chip_gen: v5e
topology: v5e:2x2
jax: 0.10.0
libtpu: 0.0.40
codegen_flags: <defaults>
</compile_context>

<pallas_src>
import functools
import math

import jax
import jax.numpy as jnp
from jax.experimental import pallas as pl
from jax.experimental.pallas import tpu as pltpu


# --------------------------------------------------------------------------
# Positional encoding (glue, plain JAX) — mirrors the PyTorch pos_encoding().
# --------------------------------------------------------------------------
def pos_encoding(n: int, e: int):
    i = jnp.arange(n, dtype=jnp.float32)[:, None]            # (n, 1)
    j = jnp.arange(e)[None, :]                                # (1, e)
    even = (j % 2) == 0
    expo = jnp.where(even, j, j - 1).astype(jnp.float32) / float(e)
    angle = i / (10000.0 ** expo)
    return jnp.where(even, jnp.sin(angle), jnp.cos(angle))    # (n, e)


def _layer_norm(x, gamma, beta, eps=1e-5):
    # PyTorch nn.LayerNorm: population variance, eps inside sqrt.
    mean = jnp.mean(x, axis=-1, keepdims=True)
    var = jnp.mean((x - mean) ** 2, axis=-1, keepdims=True)
    return (x - mean) * jax.lax.rsqrt(var + eps) * gamma + beta


# --------------------------------------------------------------------------
# Pallas kernel: one encoder layer per grid step along axis 1, batch block
# along axis 0.  The running activation stays in VMEM scratch across layers.
# --------------------------------------------------------------------------
def bert_layers_kernel(x_ref,                                  # (Bb, S, E) f32
                       wqkv_ref, bqkv_ref,                     # (1,E,3HE) bf16, (1,1,3HE) f32
                       wo_ref, bo_ref,                         # (1,H,E,E) bf16, (1,1,E) f32
                       w1_ref, b1_ref, w2_ref, b2_ref,         # FF params (per-layer slice)
                       g1_ref, be1_ref, g2_ref, be2_ref,       # LayerNorms (per-layer slice)
                       o_ref,                                  # (Bb, S, E)
                       act_ref,                                # VMEM scratch (Bb, S, E) f32
                       *, num_heads, bblk, seq):
    H, Bb, S = num_heads, bblk, seq
    E = x_ref.shape[-1]
    T = Bb * S
    layer = pl.program_id(1)

    # Layer 0 seeds the resident activation; later layers read the scratch.
    @pl.when(layer == 0)
    def _():
        act_ref[...] = x_ref[...].astype(jnp.float32)

    x = act_ref[...].reshape(T, E)                             # (T, E) f32
    xb = x.astype(jnp.bfloat16)

    # ---- Fused Q/K/V projection for all heads: one wide MXU matmul ----
    qkv = jnp.dot(xb, wqkv_ref[0], preferred_element_type=jnp.float32)
    qkv = qkv + bqkv_ref[0]                                    # (T, 3*H*E) f32

    # Split into per-(head, batch) blocks stacked along a leading axis
    # n = h*Bb + b (major-dim concat only).
    def gather_heads(block):                                   # 0:q 1:k 2:v
        parts = [
            qkv[:, (block * H + h) * E:(block * H + h + 1) * E].reshape(Bb, S, E)
            for h in range(H)
        ]
        return jnp.concatenate(parts, axis=0)                  # (H*Bb, S, E)

    q = gather_heads(0).astype(jnp.bfloat16)
    k = gather_heads(1).astype(jnp.bfloat16)
    v = gather_heads(2).astype(jnp.bfloat16)

    # ---- Attention (unscaled, matching the reference module); f32 softmax ----
    scores = jnp.einsum("nqe,nke->nqk", q, k,
                        preferred_element_type=jnp.float32)    # (N, S, S)
    scores = scores - jnp.max(scores, axis=-1, keepdims=True)
    p = jnp.exp(scores)
    p = p * pl.reciprocal(jnp.sum(p, axis=-1, keepdims=True), approx=True)

    attn = jnp.einsum("nqk,nke->nqe", p.astype(jnp.bfloat16), v,
                      preferred_element_type=jnp.float32)      # (N, S, E) f32

    # ---- Output projection without concatenation: accumulate per head ----
    mha = jnp.zeros((T, E), jnp.float32)
    for h in range(H):                                         # H is small/static
        head2d = attn[h * Bb:(h + 1) * Bb].reshape(T, E).astype(jnp.bfloat16)
        mha = mha + jnp.dot(head2d, wo_ref[0, h],
                            preferred_element_type=jnp.float32)
    mha = mha + bo_ref[0]

    x1 = _layer_norm(mha + x, g1_ref[0], be1_ref[0])           # residual + norm1

    # ---- Feed-forward (wide matmuls, bf16 operands, f32 accumulate) ----
    hdn = jnp.maximum(
        jnp.dot(x1.astype(jnp.bfloat16), w1_ref[0],
                preferred_element_type=jnp.float32) + b1_ref[0], 0.0)
    ff = jnp.dot(hdn.astype(jnp.bfloat16), w2_ref[0],
                 preferred_element_type=jnp.float32) + b2_ref[0]

    x2 = _layer_norm(ff + x1, g2_ref[0], be2_ref[0]).reshape(Bb, S, E)
    act_ref[...] = x2                                          # carry to next layer

    @pl.when(layer == pl.num_programs(1) - 1)
    def _():
        o_ref[...] = x2.astype(o_ref.dtype)


# --------------------------------------------------------------------------
# Wrapper: one pallas_call over (batch_block, layer) grid.
# --------------------------------------------------------------------------
_KERNEL_PARAM_ORDER = ("wqkv", "bqkv", "wo", "bo", "w1", "b1", "w2", "b2",
                       "g1", "be1", "g2", "be2")


def _pick_batch_block(B, S):
    # Aim for Bblk*S >= 128 rows per matmul (MXU row utilization), capped at B,
    # and require Bblk to divide B.
    target = max(1, -(-128 // S))          # ceil(128 / S)
    bblk = min(B, target)
    while B % bblk:
        bblk -= 1
    return bblk


def bert_layers_pallas(x, packed, num_heads, num_layers):
    B, S, E = x.shape
    bblk = _pick_batch_block(B, S)
    grid = (B // bblk, num_layers)

    weights = [packed[name] for name in _KERNEL_PARAM_ORDER]

    def weight_spec(arr):
        nd = arr.ndim
        # Only the current layer's slice is DMA'd each grid step (pipelined).
        return pl.BlockSpec((1,) + arr.shape[1:],
                            lambda i, l, _nd=nd: (l,) + (0,) * (_nd - 1))

    in_specs = [pl.BlockSpec((bblk, S, E), lambda i, l: (i, 0, 0))]
    in_specs += [weight_spec(w) for w in weights]
    out_spec = pl.BlockSpec((bblk, S, E), lambda i, l: (i, 0, 0))

    kernel = functools.partial(bert_layers_kernel,
                               num_heads=num_heads, bblk=bblk, seq=S)
    return pl.pallas_call(
        kernel,
        out_shape=jax.ShapeDtypeStruct((B, S, E), x.dtype),
        grid=grid,
        in_specs=in_specs,
        out_specs=out_spec,
        scratch_shapes=[pltpu.VMEM((bblk, S, E), jnp.float32)],
        compiler_params=pltpu.CompilerParams(
            dimension_semantics=("parallel", "arbitrary"),
            vmem_limit_bytes=32 * 1024 * 1024),
    )(x, *weights)


def pack_layer_for_kernel(p):
    """Module-faithful params -> fused/bf16 kernel layout (one layer)."""
    H, E, _ = p["wq"].shape
    wq2 = jnp.transpose(p["wq"], (1, 0, 2)).reshape(E, H * E)   # columns h-major
    wk2 = jnp.transpose(p["wk"], (1, 0, 2)).reshape(E, H * E)
    wv2 = jnp.transpose(p["wv"], (1, 0, 2)).reshape(E, H * E)
    wqkv = jnp.concatenate([wq2, wk2, wv2], axis=1).astype(jnp.bfloat16)
    bqkv = jnp.concatenate([p["bq"].reshape(-1), p["bk"].reshape(-1),
                            p["bv"].reshape(-1)]).reshape(1, 3 * H * E)
    return dict(
        wqkv=wqkv, bqkv=bqkv,
        wo=p["wo"].reshape(H, E, E).astype(jnp.bfloat16), bo=p["bo"],
        w1=p["w1"].astype(jnp.bfloat16), b1=p["b1"],
        w2=p["w2"].astype(jnp.bfloat16), b2=p["b2"],
        g1=p["g1"], be1=p["be1"], g2=p["g2"], be2=p["be2"])


def pack_layers_for_kernel(layer_params):
    """All layers packed and stacked along a leading L axis."""
    packed = [pack_layer_for_kernel(p) for p in layer_params]
    return {name: jnp.stack([pk[name] for pk in packed], axis=0)
            for name in _KERNEL_PARAM_ORDER}


@functools.partial(jax.jit, static_argnames=("num_heads",))
def bert_pallas(x, layer_params, num_heads):
    B, S, E = x.shape
    res = x + pos_encoding(S, E)[None]          # glue: positional-encoding add
    packed = pack_layers_for_kernel(layer_params)
    return bert_layers_pallas(res, packed, num_heads, len(layer_params))


# --------------------------------------------------------------------------
# Deterministic synthetic parameter init (shapes from the module's __init__).
# --------------------------------------------------------------------------
def init_bert_params(key, embed_size, num_heads, encoder_count):
    E, H = embed_size, num_heads

    def linear(k, fan_in, fan_out):
        k1, k2 = jax.random.split(k)
        bound = 1.0 / math.sqrt(fan_in)
        w = jax.random.uniform(k1, (fan_in, fan_out), jnp.float32, -bound, bound)
        b = jax.random.uniform(k2, (fan_out,), jnp.float32, -bound, bound)
        return w, b

    layers = []
    for _ in range(encoder_count):
        key, k_q, k_k, k_v, k_o, k_1, k_2 = jax.random.split(key, 7)

        def stack_heads(k):
            ws, bs = [], []
            for kk in jax.random.split(k, H):
                w, b = linear(kk, E, E)
                ws.append(w)
                bs.append(b)
            return jnp.stack(ws), jnp.stack(bs)      # (H,E,E), (H,E)

        wq, bq = stack_heads(k_q)
        wk, bk = stack_heads(k_k)
        wv, bv = stack_heads(k_v)
        wo, bo = linear(k_o, E * H, E)
        w1, b1 = linear(k_1, E, E)
        w2, b2 = linear(k_2, E, E)
        layers.append(dict(
            wq=wq, bq=bq, wk=wk, bk=bk, wv=wv, bv=bv,
            wo=wo, bo=bo.reshape(1, E),
            w1=w1, b1=b1.reshape(1, E),
            w2=w2, b2=b2.reshape(1, E),
            g1=jnp.ones((1, E), jnp.float32), be1=jnp.zeros((1, E), jnp.float32),
            g2=jnp.ones((1, E), jnp.float32), be2=jnp.zeros((1, E), jnp.float32),
        ))
    return layers


# --------------------------------------------------------------------------
# Pure-JAX references.  mxu_bf16=False: module-faithful f32 reference.
# mxu_bf16=True: same casting points as the kernel (tight numerics check).
# --------------------------------------------------------------------------
def encoder_layer_ref(x, p, num_heads, mxu_bf16=False):
    cast = (lambda a: a.astype(jnp.bfloat16)) if mxu_bf16 else (lambda a: a)
    B, S, E = x.shape
    H = num_heads
    xb = cast(x)
    heads = []
    for i in range(H):
        q = jnp.einsum("bse,eo->bso", xb, cast(p["wq"][i]),
                       preferred_element_type=jnp.float32) + p["bq"][i]
        k = jnp.einsum("bse,eo->bso", xb, cast(p["wk"][i]),
                       preferred_element_type=jnp.float32) + p["bk"][i]
        v = jnp.einsum("bse,eo->bso", xb, cast(p["wv"][i]),
                       preferred_element_type=jnp.float32) + p["bv"][i]
        s = jnp.einsum("bqe,bke->bqk", cast(q), cast(k),
                       preferred_element_type=jnp.float32)
        s = s - jnp.max(s, axis=-1, keepdims=True)
        a = jnp.exp(s)
        a = a / jnp.sum(a, axis=-1, keepdims=True)
        heads.append(jnp.einsum("bqk,bke->bqe", cast(a), cast(v),
                                preferred_element_type=jnp.float32))
    wo3 = p["wo"].reshape(H, E, E)
    mha = jnp.zeros((B, S, E), jnp.float32)
    for h in range(H):
        mha = mha + jnp.einsum("bse,eo->bso", cast(heads[h]), cast(wo3[h]),
                               preferred_element_type=jnp.float32)
    mha = mha + p["bo"]
    x1 = _layer_norm(mha + x, p["g1"], p["be1"])
    hdn = jnp.maximum(
        jnp.einsum("bse,eo->bso", cast(x1), cast(p["w1"]),
                   preferred_element_type=jnp.float32) + p["b1"], 0.0)
    ff = jnp.einsum("bse,eo->bso", cast(hdn), cast(p["w2"]),
                    preferred_element_type=jnp.float32) + p["b2"]
    return _layer_norm(ff + x1, p["g2"], p["be2"])


def bert_ref(x, layer_params, num_heads, mxu_bf16=False):
    B, S, E = x.shape
    res = x + pos_encoding(S, E)[None]
    for p in layer_params:
        res = encoder_layer_ref(res, p, num_heads, mxu_bf16=mxu_bf16)
    return res


if __name__ == "__main__":
    B, S, E, H, L = 2, 8, 32, 2, 2    # batch, seq, embed, heads, encoder layers
    key = jax.random.PRNGKey(0)
    k_x, k_p = jax.random.split(key)
    x = jax.random.normal(k_x, (B, S, E), jnp.float32)
    params = init_bert_params(k_p, E, H, L)

    out = jax.block_until_ready(bert_pallas(x, params, H))
    assert out.shape == (B, S, E)

    # Tight check against a reference with identical bf16-MXU casting points.
    ref_bf16 = bert_ref(x, params, H, mxu_bf16=True)
    assert bool(jnp.allclose(out, ref_bf16, atol=3e-2, rtol=3e-2)), \
        "kernel vs bf16-matched reference mismatch"

    # Looser check against the module-faithful full-f32 reference.
    ref_f32 = bert_ref(x, params, H, mxu_bf16=False)
    assert bool(jnp.allclose(out, ref_f32, atol=1e-1, rtol=1e-1)), \
        "kernel vs f32 reference mismatch"

    print("KERNEL_OK")
</pallas_src>

<mosaic_0001>
module attributes {stable_mosaic.version = 11 : i64} {
  func.func @bert_layers_kernel(%arg0: i32, %arg1: i32, %arg2: memref<2x8x32xf32, #tpu.memory_space<vmem>>, %arg3: memref<1x32x192xbf16, #tpu.memory_space<vmem>>, %arg4: memref<1x1x192xf32, #tpu.memory_space<vmem>>, %arg5: memref<1x2x32x32xbf16, #tpu.memory_space<vmem>>, %arg6: memref<1x1x32xf32, #tpu.memory_space<vmem>>, %arg7: memref<1x32x32xbf16, #tpu.memory_space<vmem>>, %arg8: memref<1x1x32xf32, #tpu.memory_space<vmem>>, %arg9: memref<1x32x32xbf16, #tpu.memory_space<vmem>>, %arg10: memref<1x1x32xf32, #tpu.memory_space<vmem>>, %arg11: memref<1x1x32xf32, #tpu.memory_space<vmem>>, %arg12: memref<1x1x32xf32, #tpu.memory_space<vmem>>, %arg13: memref<1x1x32xf32, #tpu.memory_space<vmem>>, %arg14: memref<1x1x32xf32, #tpu.memory_space<vmem>>, %arg15: memref<2x8x32xf32, #tpu.memory_space<vmem>>, %arg16: memref<2x8x32xf32, #tpu.memory_space<vmem>>) attributes {dimension_semantics = [#tpu.dimension_semantics<parallel>, #tpu.dimension_semantics<arbitrary>], iteration_bounds = array<i64: 1, 2>, scalar_prefetch = 0 : i64, scratch_operands = 1 : i64, tpu.core_type = #tpu.core_type<tc>, window_params = [{transform_indices = @transform_0, window_bounds = array<i64: 2, 8, 32>}, {transform_indices = @transform_1, window_bounds = array<i64: 1, 32, 192>}, {transform_indices = @transform_2, window_bounds = array<i64: 1, 1, 192>}, {transform_indices = @transform_3, window_bounds = array<i64: 1, 2, 32, 32>}, {transform_indices = @transform_4, window_bounds = array<i64: 1, 1, 32>}, {transform_indices = @transform_5, window_bounds = array<i64: 1, 32, 32>}, {transform_indices = @transform_6, window_bounds = array<i64: 1, 1, 32>}, {transform_indices = @transform_7, window_bounds = array<i64: 1, 32, 32>}, {transform_indices = @transform_8, window_bounds = array<i64: 1, 1, 32>}, {transform_indices = @transform_9, window_bounds = array<i64: 1, 1, 32>}, {transform_indices = @transform_10, window_bounds = array<i64: 1, 1, 32>}, {transform_indices = @transform_11, window_bounds = array<i64: 1, 1, 32>}, {transform_indices = @transform_12, window_bounds = array<i64: 1, 1, 32>}, {transform_indices = @transform_13, window_bounds = array<i64: 2, 8, 32>}]} {
    %c0_i32 = arith.constant 0 : i32
    %0 = arith.cmpi eq, %arg1, %c0_i32 : i32
    %1 = arith.extui %0 : i1 to i32
    %c0_i32_0 = arith.constant 0 : i32
    %2 = arith.cmpi ne, %1, %c0_i32_0 : i32
    scf.if %2 {
      %c0_67 = arith.constant 0 : index
      %c0_68 = arith.constant 0 : index
      %c0_69 = arith.constant 0 : index
      %140 = vector.load %arg2[%c0_67, %c0_68, %c0_69] : memref<2x8x32xf32, #tpu.memory_space<vmem>>, vector<2x8x32xf32>
      %c0_70 = arith.constant 0 : index
      %c0_71 = arith.constant 0 : index
      %c0_72 = arith.constant 0 : index
      %141 = vector.load %arg16[%c0_70, %c0_71, %c0_72] : memref<2x8x32xf32, #tpu.memory_space<vmem>>, vector<2x8x32xf32>
      tpu.vector_store %arg16[%c0_70, %c0_71, %c0_72], %140 {strides = array<i32>} : memref<2x8x32xf32, #tpu.memory_space<vmem>>, vector<2x8x32xf32>,
    } else {
    }
    %c0 = arith.constant 0 : index
    %c0_1 = arith.constant 0 : index
    %c0_2 = arith.constant 0 : index
    %3 = vector.load %arg16[%c0, %c0_1, %c0_2] : memref<2x8x32xf32, #tpu.memory_space<vmem>>, vector<2x8x32xf32>
    %4 = vector.shape_cast %3 : vector<2x8x32xf32> to vector<16x32xf32>
    %5 = arith.truncf %4 : vector<16x32xf32> to vector<16x32xbf16>
    %c0_3 = arith.constant 0 : index
    %c0_4 = arith.constant 0 : index
    %c0_5 = arith.constant 0 : index
    %6 = vector.load %arg3[%c0_3, %c0_4, %c0_5] : memref<1x32x192xbf16, #tpu.memory_space<vmem>>, vector<1x32x192xbf16>
    %7 = vector.shape_cast %6 : vector<1x32x192xbf16> to vector<32x192xbf16>
    %cst = arith.constant dense<0.000000e+00> : vector<16x192xf32>
    %8 = tpu.matmul %5, %7, %cst {dimension_numbers = #tpu.dot_dimension_numbers<[1], [0], [0], [1], [0, 0, 1, 1], [], []>} : vector<16x32xbf16>, vector<32x192xbf16>, vector<16x192xf32> -> vector<16x192xf32>
    %c0_6 = arith.constant 0 : index
    %c0_7 = arith.constant 0 : index
    %c0_8 = arith.constant 0 : index
    %9 = vector.load %arg4[%c0_6, %c0_7, %c0_8] : memref<1x1x192xf32, #tpu.memory_space<vmem>>, vector<1x1x192xf32>
    %10 = vector.shape_cast %9 : vector<1x1x192xf32> to vector<1x192xf32>
    %11 = vector.broadcast %10 : vector<1x192xf32> to vector<16x192xf32>
    %12 = arith.addf %8, %11 : vector<16x192xf32>
    %13 = vector.extract_strided_slice %12 {offsets = [0, 0], sizes = [16, 32], strides = [1, 1]} : vector<16x192xf32> to vector<16x32xf32>
    %14 = vector.shape_cast %13 : vector<16x32xf32> to vector<2x8x32xf32>
    %15 = vector.extract_strided_slice %12 {offsets = [0, 32], sizes = [16, 32], strides = [1, 1]} : vector<16x192xf32> to vector<16x32xf32>
    %16 = vector.shape_cast %15 : vector<16x32xf32> to vector<2x8x32xf32>
    %17 = tpu.concatenate %14, %16 in 0 : vector<2x8x32xf32>, vector<2x8x32xf32> -> vector<4x8x32xf32>
    %18 = arith.truncf %17 : vector<4x8x32xf32> to vector<4x8x32xbf16>
    %19 = vector.extract_strided_slice %12 {offsets = [0, 64], sizes = [16, 32], strides = [1, 1]} : vector<16x192xf32> to vector<16x32xf32>
    %20 = vector.shape_cast %19 : vector<16x32xf32> to vector<2x8x32xf32>
    %21 = vector.extract_strided_slice %12 {offsets = [0, 96], sizes = [16, 32], strides = [1, 1]} : vector<16x192xf32> to vector<16x32xf32>
    %22 = vector.shape_cast %21 : vector<16x32xf32> to vector<2x8x32xf32>
    %23 = tpu.concatenate %20, %22 in 0 : vector<2x8x32xf32>, vector<2x8x32xf32> -> vector<4x8x32xf32>
    %24 = arith.truncf %23 : vector<4x8x32xf32> to vector<4x8x32xbf16>
    %25 = vector.extract_strided_slice %12 {offsets = [0, 128], sizes = [16, 32], strides = [1, 1]} : vector<16x192xf32> to vector<16x32xf32>
    %26 = vector.shape_cast %25 : vector<16x32xf32> to vector<2x8x32xf32>
    %27 = vector.extract_strided_slice %12 {offsets = [0, 160], sizes = [16, 32], strides = [1, 1]} : vector<16x192xf32> to vector<16x32xf32>
    %28 = vector.shape_cast %27 : vector<16x32xf32> to vector<2x8x32xf32>
    %29 = tpu.concatenate %26, %28 in 0 : vector<2x8x32xf32>, vector<2x8x32xf32> -> vector<4x8x32xf32>
    %30 = arith.truncf %29 : vector<4x8x32xf32> to vector<4x8x32xbf16>
    "tpu.trace_start"() <{level = 10 : i32, message = "nqe,nke->nqk"}> : () -> ()
    %cst_9 = arith.constant dense<0.000000e+00> : vector<4x8x8xf32>
    %31 = tpu.matmul %18, %24, %cst_9 {dimension_numbers = #tpu.dot_dimension_numbers<[2], [2], [1], [1], [0, 0, 0, 1, 1, 1], [0], [0]>} : vector<4x8x32xbf16>, vector<4x8x32xbf16>, vector<4x8x8xf32> -> vector<4x8x8xf32>
    "tpu.trace_stop"() : () -> ()
    %cst_10 = arith.constant dense<0xFF800000> : vector<4x8xf32>
    %32 = vector.multi_reduction <maximumf>, %31, %cst_10 [2] : vector<4x8x8xf32> to vector<4x8xf32>
    %33 = vector.shape_cast %32 : vector<4x8xf32> to vector<4x8x1xf32>
    %34 = vector.broadcast %33 : vector<4x8x1xf32> to vector<4x8x8xf32>
    %35 = arith.subf %31, %34 : vector<4x8x8xf32>
    %36 = math.exp %35 : vector<4x8x8xf32>
    %cst_11 = arith.constant dense<0.000000e+00> : vector<4x8xf32>
    %37 = vector.multi_reduction <add>, %36, %cst_11 [2] : vector<4x8x8xf32> to vector<4x8xf32>
    %38 = vector.shape_cast %37 : vector<4x8xf32> to vector<4x8x1xf32>
    %39 = tpu.reciprocal %38 {approx = true} : vector<4x8x1xf32> -> vector<4x8x1xf32>
    %40 = vector.broadcast %39 : vector<4x8x1xf32> to vector<4x8x8xf32>
    %41 = arith.mulf %36, %40 : vector<4x8x8xf32>
    %42 = arith.truncf %41 : vector<4x8x8xf32> to vector<4x8x8xbf16>
    "tpu.trace_start"() <{level = 10 : i32, message = "nqk,nke->nqe"}> : () -> ()
    %cst_12 = arith.constant dense<0.000000e+00> : vector<4x8x32xf32>
    %43 = tpu.matmul %42, %30, %cst_12 {dimension_numbers = #tpu.dot_dimension_numbers<[2], [1], [1], [2], [0, 0, 0, 1, 1, 2], [0], [0]>} : vector<4x8x8xbf16>, vector<4x8x32xbf16>, vector<4x8x32xf32> -> vector<4x8x32xf32>
    %cst_13 = arith.constant 0.000000e+00 : f32
    "tpu.trace_stop"() : () -> ()
    %44 = vector.broadcast %cst_13 : f32 to vector<16x32xf32>
    %45 = vector.extract_strided_slice %43 {offsets = [0, 0, 0], sizes = [2, 8, 32], strides = [1, 1, 1]} : vector<4x8x32xf32> to vector<2x8x32xf32>
    %46 = vector.shape_cast %45 : vector<2x8x32xf32> to vector<16x32xf32>
    %47 = arith.truncf %46 : vector<16x32xf32> to vector<16x32xbf16>
    %c0_14 = arith.constant 0 : index
    %c0_15 = arith.constant 0 : index
    %c0_16 = arith.constant 0 : index
    %c0_17 = arith.constant 0 : index
    %48 = vector.load %arg5[%c0_14, %c0_15, %c0_16, %c0_17] : memref<1x2x32x32xbf16, #tpu.memory_space<vmem>>, vector<1x1x32x32xbf16>
    %49 = vector.shape_cast %48 : vector<1x1x32x32xbf16> to vector<32x32xbf16>
    %cst_18 = arith.constant dense<0.000000e+00> : vector<16x32xf32>
    %50 = tpu.matmul %47, %49, %cst_18 {dimension_numbers = #tpu.dot_dimension_numbers<[1], [0], [0], [1], [0, 0, 1, 1], [], []>} : vector<16x32xbf16>, vector<32x32xbf16>, vector<16x32xf32> -> vector<16x32xf32>
    %51 = arith.addf %44, %50 : vector<16x32xf32>
    %52 = vector.extract_strided_slice %43 {offsets = [2, 0, 0], sizes = [2, 8, 32], strides = [1, 1, 1]} : vector<4x8x32xf32> to vector<2x8x32xf32>
    %53 = vector.shape_cast %52 : vector<2x8x32xf32> to vector<16x32xf32>
    %54 = arith.truncf %53 : vector<16x32xf32> to vector<16x32xbf16>
    %c0_19 = arith.constant 0 : index
    %c1 = arith.constant 1 : index
    %c0_20 = arith.constant 0 : index
    %c0_21 = arith.constant 0 : index
    %55 = vector.load %arg5[%c0_19, %c1, %c0_20, %c0_21] : memref<1x2x32x32xbf16, #tpu.memory_space<vmem>>, vector<1x1x32x32xbf16>
    %56 = vector.shape_cast %55 : vector<1x1x32x32xbf16> to vector<32x32xbf16>
    %cst_22 = arith.constant dense<0.000000e+00> : vector<16x32xf32>
    %57 = tpu.matmul %54, %56, %cst_22 {dimension_numbers = #tpu.dot_dimension_numbers<[1], [0], [0], [1], [0, 0, 1, 1], [], []>} : vector<16x32xbf16>, vector<32x32xbf16>, vector<16x32xf32> -> vector<16x32xf32>
    %58 = arith.addf %51, %57 : vector<16x32xf32>
    %c0_23 = arith.constant 0 : index
    %c0_24 = arith.constant 0 : index
    %c0_25 = arith.constant 0 : index
    %59 = vector.load %arg6[%c0_23, %c0_24, %c0_25] : memref<1x1x32xf32, #tpu.memory_space<vmem>>, vector<1x1x32xf32>
    %60 = vector.shape_cast %59 : vector<1x1x32xf32> to vector<1x32xf32>
    %61 = vector.broadcast %60 : vector<1x32xf32> to vector<16x32xf32>
    %62 = arith.addf %58, %61 : vector<16x32xf32>
    %63 = arith.addf %62, %4 : vector<16x32xf32>
    %c0_26 = arith.constant 0 : index
    %c0_27 = arith.constant 0 : index
    %c0_28 = arith.constant 0 : index
    %64 = vector.load %arg11[%c0_26, %c0_27, %c0_28] : memref<1x1x32xf32, #tpu.memory_space<vmem>>, vector<1x1x32xf32>
    %65 = vector.shape_cast %64 : vector<1x1x32xf32> to vector<1x32xf32>
    %c0_29 = arith.constant 0 : index
    %c0_30 = arith.constant 0 : index
    %c0_31 = arith.constant 0 : index
    %66 = vector.load %arg12[%c0_29, %c0_30, %c0_31] : memref<1x1x32xf32, #tpu.memory_space<vmem>>, vector<1x1x32xf32>
    %67 = vector.shape_cast %66 : vector<1x1x32xf32> to vector<1x32xf32>
    %cst_32 = arith.constant dense<0.000000e+00> : vector<16xf32>
    %68 = vector.multi_reduction <add>, %63, %cst_32 [1] : vector<16x32xf32> to vector<16xf32>
    %69 = vector.shape_cast %68 : vector<16xf32> to vector<16x1xf32>
    %cst_33 = arith.constant 3.200000e+01 : f32
    %70 = vector.broadcast %cst_33 : f32 to vector<16x1xf32>
    %71 = arith.divf %69, %70 : vector<16x1xf32>
    %72 = vector.broadcast %71 : vector<16x1xf32> to vector<16x32xf32>
    %73 = arith.subf %63, %72 : vector<16x32xf32>
    %74 = arith.mulf %73, %73 : vector<16x32xf32>
    %cst_34 = arith.constant dense<0.000000e+00> : vector<16xf32>
    %75 = vector.multi_reduction <add>, %74, %cst_34 [1] : vector<16x32xf32> to vector<16xf32>
    %76 = vector.shape_cast %75 : vector<16xf32> to vector<16x1xf32>
    %cst_35 = arith.constant 3.200000e+01 : f32
    %77 = vector.broadcast %cst_35 : f32 to vector<16x1xf32>
    %78 = arith.divf %76, %77 : vector<16x1xf32>
    %79 = vector.broadcast %71 : vector<16x1xf32> to vector<16x32xf32>
    %80 = arith.subf %63, %79 : vector<16x32xf32>
    %cst_36 = arith.constant 9.99999974E-6 : f32
    %81 = vector.broadcast %cst_36 : f32 to vector<16x1xf32>
    %82 = arith.addf %78, %81 : vector<16x1xf32>
    %83 = math.rsqrt %82 : vector<16x1xf32>
    %84 = vector.broadcast %83 : vector<16x1xf32> to vector<16x32xf32>
    %85 = arith.mulf %80, %84 : vector<16x32xf32>
    %86 = vector.broadcast %65 : vector<1x32xf32> to vector<16x32xf32>
    %87 = arith.mulf %85, %86 : vector<16x32xf32>
    %88 = vector.broadcast %67 : vector<1x32xf32> to vector<16x32xf32>
    %89 = arith.addf %87, %88 : vector<16x32xf32>
    %90 = arith.truncf %89 : vector<16x32xf32> to vector<16x32xbf16>
    %c0_37 = arith.constant 0 : index
    %c0_38 = arith.constant 0 : index
    %c0_39 = arith.constant 0 : index
    %91 = vector.load %arg7[%c0_37, %c0_38, %c0_39] : memref<1x32x32xbf16, #tpu.memory_space<vmem>>, vector<1x32x32xbf16>
    %92 = vector.shape_cast %91 : vector<1x32x32xbf16> to vector<32x32xbf16>
    %cst_40 = arith.constant dense<0.000000e+00> : vector<16x32xf32>
    %93 = tpu.matmul %90, %92, %cst_40 {dimension_numbers = #tpu.dot_dimension_numbers<[1], [0], [0], [1], [0, 0, 1, 1], [], []>} : vector<16x32xbf16>, vector<32x32xbf16>, vector<16x32xf32> -> vector<16x32xf32>
    %c0_41 = arith.constant 0 : index
    %c0_42 = arith.constant 0 : index
    %c0_43 = arith.constant 0 : index
    %94 = vector.load %arg8[%c0_41, %c0_42, %c0_43] : memref<1x1x32xf32, #tpu.memory_space<vmem>>, vector<1x1x32xf32>
    %95 = vector.shape_cast %94 : vector<1x1x32xf32> to vector<1x32xf32>
    %96 = vector.broadcast %95 : vector<1x32xf32> to vector<16x32xf32>
    %97 = arith.addf %93, %96 : vector<16x32xf32>
    %cst_44 = arith.constant 0.000000e+00 : f32
    %98 = vector.broadcast %cst_44 : f32 to vector<16x32xf32>
    %99 = arith.maximumf %97, %98 : vector<16x32xf32>
    %100 = arith.truncf %99 : vector<16x32xf32> to vector<16x32xbf16>
    %c0_45 = arith.constant 0 : index
    %c0_46 = arith.constant 0 : index
    %c0_47 = arith.constant 0 : index
    %101 = vector.load %arg9[%c0_45, %c0_46, %c0_47] : memref<1x32x32xbf16, #tpu.memory_space<vmem>>, vector<1x32x32xbf16>
    %102 = vector.shape_cast %101 : vector<1x32x32xbf16> to vector<32x32xbf16>
    %cst_48 = arith.constant dense<0.000000e+00> : vector<16x32xf32>
    %103 = tpu.matmul %100, %102, %cst_48 {dimension_numbers = #tpu.dot_dimension_numbers<[1], [0], [0], [1], [0, 0, 1, 1], [], []>} : vector<16x32xbf16>, vector<32x32xbf16>, vector<16x32xf32> -> vector<16x32xf32>
    %c0_49 = arith.constant 0 : index
    %c0_50 = arith.constant 0 : index
    %c0_51 = arith.constant 0 : index
    %104 = vector.load %arg10[%c0_49, %c0_50, %c0_51] : memref<1x1x32xf32, #tpu.memory_space<vmem>>, vector<1x1x32xf32>
    %105 = vector.shape_cast %104 : vector<1x1x32xf32> to vector<1x32xf32>
    %106 = vector.broadcast %105 : vector<1x32xf32> to vector<16x32xf32>
    %107 = arith.addf %103, %106 : vector<16x32xf32>
    %108 = arith.addf %107, %89 : vector<16x32xf32>
    %c0_52 = arith.constant 0 : index
    %c0_53 = arith.constant 0 : index
    %c0_54 = arith.constant 0 : index
    %109 = vector.load %arg13[%c0_52, %c0_53, %c0_54] : memref<1x1x32xf32, #tpu.memory_space<vmem>>, vector<1x1x32xf32>
    %110 = vector.shape_cast %109 : vector<1x1x32xf32> to vector<1x32xf32>
    %c0_55 = arith.constant 0 : index
    %c0_56 = arith.constant 0 : index
    %c0_57 = arith.constant 0 : index
    %111 = vector.load %arg14[%c0_55, %c0_56, %c0_57] : memref<1x1x32xf32, #tpu.memory_space<vmem>>, vector<1x1x32xf32>
    %112 = vector.shape_cast %111 : vector<1x1x32xf32> to vector<1x32xf32>
    %cst_58 = arith.constant dense<0.000000e+00> : vector<16xf32>
    %113 = vector.multi_reduction <add>, %108, %cst_58 [1] : vector<16x32xf32> to vector<16xf32>
    %114 = vector.shape_cast %113 : vector<16xf32> to vector<16x1xf32>
    %cst_59 = arith.constant 3.200000e+01 : f32
    %115 = vector.broadcast %cst_59 : f32 to vector<16x1xf32>
    %116 = arith.divf %114, %115 : vector<16x1xf32>
    %117 = vector.broadcast %116 : vector<16x1xf32> to vector<16x32xf32>
    %118 = arith.subf %108, %117 : vector<16x32xf32>
    %119 = arith.mulf %118, %118 : vector<16x32xf32>
    %cst_60 = arith.constant dense<0.000000e+00> : vector<16xf32>
    %120 = vector.multi_reduction <add>, %119, %cst_60 [1] : vector<16x32xf32> to vector<16xf32>
    %121 = vector.shape_cast %120 : vector<16xf32> to vector<16x1xf32>
    %cst_61 = arith.constant 3.200000e+01 : f32
    %122 = vector.broadcast %cst_61 : f32 to vector<16x1xf32>
    %123 = arith.divf %121, %122 : vector<16x1xf32>
    %124 = vector.broadcast %116 : vector<16x1xf32> to vector<16x32xf32>
    %125 = arith.subf %108, %124 : vector<16x32xf32>
    %cst_62 = arith.constant 9.99999974E-6 : f32
    %126 = vector.broadcast %cst_62 : f32 to vector<16x1xf32>
    %127 = arith.addf %123, %126 : vector<16x1xf32>
    %128 = math.rsqrt %127 : vector<16x1xf32>
    %129 = vector.broadcast %128 : vector<16x1xf32> to vector<16x32xf32>
    %130 = arith.mulf %125, %129 : vector<16x32xf32>
    %131 = vector.broadcast %110 : vector<1x32xf32> to vector<16x32xf32>
    %132 = arith.mulf %130, %131 : vector<16x32xf32>
    %133 = vector.broadcast %112 : vector<1x32xf32> to vector<16x32xf32>
    %134 = arith.addf %132, %133 : vector<16x32xf32>
    %135 = vector.shape_cast %134 : vector<16x32xf32> to vector<2x8x32xf32>
    %c0_63 = arith.constant 0 : index
    %c0_64 = arith.constant 0 : index
    %c0_65 = arith.constant 0 : index
    %136 = vector.load %arg16[%c0_63, %c0_64, %c0_65] : memref<2x8x32xf32, #tpu.memory_space<vmem>>, vector<2x8x32xf32>
    tpu.vector_store %arg16[%c0_63, %c0_64, %c0_65], %135 {strides = array<i32>} : memref<2x8x32xf32, #tpu.memory_space<vmem>>, vector<2x8x32xf32>,
    %c1_i32 = arith.constant 1 : i32
    %137 = arith.cmpi eq, %arg1, %c1_i32 : i32
    %138 = arith.extui %137 : i1 to i32
    %c0_i32_66 = arith.constant 0 : i32
    %139 = arith.cmpi ne, %138, %c0_i32_66 : i32
    scf.if %139 {
      %c0_67 = arith.constant 0 : index
      %c0_68 = arith.constant 0 : index
      %c0_69 = arith.constant 0 : index
      %140 = vector.load %arg15[%c0_67, %c0_68, %c0_69] : memref<2x8x32xf32, #tpu.memory_space<vmem>>, vector<2x8x32xf32>
      tpu.vector_store %arg15[%c0_67, %c0_68, %c0_69], %135 {strides = array<i32>} : memref<2x8x32xf32, #tpu.memory_space<vmem>>, vector<2x8x32xf32>,
    } else {
    }
    return
  }
  func.func @transform_0(%arg0: i32, %arg1: i32) -> (i32, i32, i32) {
    %c0_i32 = arith.constant 0 : i32
    %c0_i32_0 = arith.constant 0 : i32
    %c0_i32_1 = arith.constant 0 : i32
    return %arg0, %c0_i32, %c0_i32_0 : i32, i32, i32
  }
  func.func @transform_1(%arg0: i32, %arg1: i32) -> (i32, i32, i32) {
    %c0_i32 = arith.constant 0 : i32
    %c0_i32_0 = arith.constant 0 : i32
    %c0_i32_1 = arith.constant 0 : i32
    return %arg1, %c0_i32, %c0_i32_0 : i32, i32, i32
  }
  func.func @transform_2(%arg0: i32, %arg1: i32) -> (i32, i32, i32) {
    %c0_i32 = arith.constant 0 : i32
    %c0_i32_0 = arith.constant 0 : i32
    %c0_i32_1 = arith.constant 0 : i32
    return %arg1, %c0_i32, %c0_i32_0 : i32, i32, i32
  }
  func.func @transform_3(%arg0: i32, %arg1: i32) -> (i32, i32, i32, i32) {
    %c0_i32 = arith.constant 0 : i32
    %c0_i32_0 = arith.constant 0 : i32
    %c0_i32_1 = arith.constant 0 : i32
    %c0_i32_2 = arith.constant 0 : i32
    return %arg1, %c0_i32, %c0_i32_0, %c0_i32_1 : i32, i32, i32, i32
  }
  func.func @transform_4(%arg0: i32, %arg1: i32) -> (i32, i32, i32) {
    %c0_i32 = arith.constant 0 : i32
    %c0_i32_0 = arith.constant 0 : i32
    %c0_i32_1 = arith.constant 0 : i32
    return %arg1, %c0_i32, %c0_i32_0 : i32, i32, i32
  }
  func.func @transform_5(%arg0: i32, %arg1: i32) -> (i32, i32, i32) {
    %c0_i32 = arith.constant 0 : i32
    %c0_i32_0 = arith.constant 0 : i32
    %c0_i32_1 = arith.constant 0 : i32
    return %arg1, %c0_i32, %c0_i32_0 : i32, i32, i32
  }
  func.func @transform_6(%arg0: i32, %arg1: i32) -> (i32, i32, i32) {
    %c0_i32 = arith.constant 0 : i32
    %c0_i32_0 = arith.constant 0 : i32
    %c0_i32_1 = arith.constant 0 : i32
    return %arg1, %c0_i32, %c0_i32_0 : i32, i32, i32
  }
  func.func @transform_7(%arg0: i32, %arg1: i32) -> (i32, i32, i32) {
    %c0_i32 = arith.constant 0 : i32
    %c0_i32_0 = arith.constant 0 : i32
    %c0_i32_1 = arith.constant 0 : i32
    return %arg1, %c0_i32, %c0_i32_0 : i32, i32, i32
  }
  func.func @transform_8(%arg0: i32, %arg1: i32) -> (i32, i32, i32) {
    %c0_i32 = arith.constant 0 : i32
    %c0_i32_0 = arith.constant 0 : i32
    %c0_i32_1 = arith.constant 0 : i32
    return %arg1, %c0_i32, %c0_i32_0 : i32, i32, i32
  }
  func.func @transform_9(%arg0: i32, %arg1: i32) -> (i32, i32, i32) {
    %c0_i32 = arith.constant 0 : i32
    %c0_i32_0 = arith.constant 0 : i32
    %c0_i32_1 = arith.constant 0 : i32
    return %arg1, %c0_i32, %c0_i32_0 : i32, i32, i32
  }
  func.func @transform_10(%arg0: i32, %arg1: i32) -> (i32, i32, i32) {
    %c0_i32 = arith.constant 0 : i32
    %c0_i32_0 = arith.constant 0 : i32
    %c0_i32_1 = arith.constant 0 : i32
    return %arg1, %c0_i32, %c0_i32_0 : i32, i32, i32
  }
  func.func @transform_11(%arg0: i32, %arg1: i32) -> (i32, i32, i32) {
    %c0_i32 = arith.constant 0 : i32
    %c0_i32_0 = arith.constant 0 : i32
    %c0_i32_1 = arith.constant 0 : i32
    return %arg1, %c0_i32, %c0_i32_0 : i32, i32, i32
  }
  func.func @transform_12(%arg0: i32, %arg1: i32) -> (i32, i32, i32) {
    %c0_i32 = arith.constant 0 : i32
    %c0_i32_0 = arith.constant 0 : i32
    %c0_i32_1 = arith.constant 0 : i32
    return %arg1, %c0_i32, %c0_i32_0 : i32, i32, i32
  }
  func.func @transform_13(%arg0: i32, %arg1: i32) -> (i32, i32, i32) {
    %c0_i32 = arith.constant 0 : i32
    %c0_i32_0 = arith.constant 0 : i32
    %c0_i32_1 = arith.constant 0 : i32
    return %arg0, %c0_i32, %c0_i32_0 : i32, i32, i32
  }
}

</mosaic_0001>

<bundles_post_ra>
// kernel: bert_pallas.1
= control target key start
LH: loop header
LB: loop body
LE: loop exit
PB: predicated region body
PF: predicated region fallthrough
CT: control target
= control target key end

     0   :  { %s1971_s0 = inlined_call_operand.vmem [shape: f32[2,8,32], index: 0, kind: input, shape index: {}]   ;;  %s1972_s1 = inlined_call_operand.vmem [shape: bf16[2,32,192], index: 1, kind: input, shape index: {}]   ;;  %s1973_s2 = inlined_call_operand.vmem [shape: f32[2,1,192], index: 2, kind: input, shape index: {}]   ;;  %s1974_s3 = inlined_call_operand.vmem [shape: bf16[2,2,32,32], index: 3, kind: input, shape index: {}]   ;;  %s1975_s4 = inlined_call_operand.vmem [shape: f32[2,1,32], index: 4, kind: input, shape index: {}]   ;;  %s1976_s5 = inlined_call_operand.vmem [shape: bf16[2,32,32], index: 5, kind: input, shape index: {}]   ;;  %s1977_s6 = inlined_call_operand.vmem [shape: f32[2,1,32], index: 6, kind: input, shape index: {}]   ;;  %s1978_s7 = inlined_call_operand.vmem [shape: bf16[2,32,32], index: 7, kind: input, shape index: {}]   ;;  %s1979_s8 = inlined_call_operand.vmem [shape: f32[2,1,32], index: 8, kind: input, shape index: {}]   ;;  %s1980_s9 = inlined_call_operand.vmem [shape: f32[2,1,32], index: 9, kind: input, shape index: {}]   ;;  %s1981_s10 = inlined_call_operand.vmem [shape: f32[2,1,32], index: 10, kind: input, shape index: {}]   ;;  %s1982_s11 = inlined_call_operand.vmem [shape: f32[2,1,32], index: 11, kind: input, shape index: {}]   ;;  %s1983_s12 = inlined_call_operand.vmem [shape: f32[2,1,32], index: 12, kind: input, shape index: {}]   ;;  %s1984_s13 = inlined_call_operand.hbm [shape: f32[2,8,32], index: 13, kind: output, shape index: {}]  }
   0x1   :  { %1988 = sst [smem:[#allocation9_spill]] %s1971_s0 }
   0x2   :  { %1989 = sst [smem:[#allocation10_spill]] %s1972_s1 }
   0x3   :  { %1990 = sst [smem:[#allocation11_spill]] %s1973_s2 }
   0x4   :  { %1991 = sst [smem:[#allocation12_spill]] %s1974_s3 }
   0x5   :  { %1992 = sst [smem:[#allocation13_spill]] %s1976_s5 }
   0x6   :  { %1993 = sst [smem:[#allocation14_spill]] %s1984_s13 }
   0x7   :  { %18 = vsyncpa [#allocation4], 0  ;;  %s1750_s25 = smov 0   ;;  %s1752_s26 = smov 0  }
   0x8   :  { %s1754_s27 = smov 0  }
   0x9 LB: > { %1994 = sst [smem:[#allocation6_spill]] %s1668_s26  ;;  %s33_s29 = sadd.s32 1, %s1668_s26  ;;  %s1672_s27 = sphi %s1754_s27, %s24_s27   ;;  %s1668_s26 = sphi %s1752_s26, %s2009_s26   ;;  %s1664_s25 = sphi %s1750_s25, %s2008_s25  }
   0xa   : > { %1995 = sst [smem:[#allocation7_spill]] %s1672_s27  ;;  %p34_p0 = scmp.ge.s32.totalorder %s33_s29, 2 }
   0xb   : > { %p1441_p1 = scmp.ge.s32.totalorder %s1672_s27, 1  ;;  %p506_p2 = scmp.lt.s32.totalorder %s1672_s27, 3 }
   0xc   : > { %s2011_s29 = smov (%p34_p0, %s33_s29), 0 }
   0xd   : > { %1996 = sst [smem:[#allocation8_spill]] %s2011_s29  ;;  %p507_p3 = pnand %p1441_p1, %p506_p2 }
   0xe   : > { %p596_p4 = scmp.lt.s32.totalorder (!%p507_p3), %s1664_s25, 1  ;;  %s1997_s1 = sld [smem:[#allocation10_spill]] (!%p507_p3) }
   0xf   : > { %510 = sbr.rel (%p507_p3) target bundleno = 1917 (0x77d), region = 72  ;;  %s1998_s2 = sld [smem:[#allocation11_spill]] (!%p507_p3) }
  0x10   : > { %s1999_s3 = sld [smem:[#allocation12_spill]] (!%p507_p3)  ;;  %p1451_p5 = scmp.ne.s32.totalorder (!%p507_p3), %s1664_s25, 0 }
  0x11   : > { %s2000_s5 = sld [smem:[#allocation13_spill]] (!%p507_p3) }
  0x14   : > { %s1773_s30 = scalar_select %p596_p4, %s1664_s25, 1 }
  0x15   : > { %s2001_s23 = sld [smem:[#allocation9_spill]] (!%p1451_p5) }
  0x16   : > { %s1523_s14 = sshll.u32 %s1773_s30, 5  ;;  %s1444_s15 = sshll.u32 %s1773_s30, 1 }
  0x17   : > { %s1780_s18 = scalar_lea.vmem %s1997_s1, %s1523_s14  ;;  %s1785_s21 = scalar_lea.vmem %s1998_s2, %s1444_s15 }
  0x18   : > { %s1790_s24 = scalar_lea.vmem %s1999_s3, %s1523_s14  ;;  %s1525_s13 = sshll.u32 %s1773_s30, 4 }
  0x19   : > { %s1804_s19 = scalar_lea.vmem %s2000_s5, %s1525_s13  ;;  %s1809_s22 = scalar_lea.vmem %s1978_s7, %s1525_s13 }
  0x1a   : > { %s628_s28 = scalar_lea.vmem %s1979_s8, %s1773_s30  ;;  %s631_s2 = scalar_lea.vmem %s1980_s9, %s1773_s30 }
  0x1b   : > { %s634_s16 = scalar_lea.vmem %s1981_s10, %s1773_s30  ;;  %s637_s3 = scalar_lea.vmem %s1982_s11, %s1773_s30 }
  0x1c   : > { %s640_s13 = scalar_lea.vmem %s1983_s12, %s1773_s30  ;;  %646 = sbr.rel (%p1451_p5) target bundleno = 36 (0x24), region = 76 }
  0x21   : > { %v647_v0 = vld [vmem:[%s2001_s23] sm:$0xff]  ;;  %vm649_vm0 = vcmask 261120   ;;  %v648_v1 = vld [vmem:[%s2001_s23 + $0x8] sm:$0xff] }
  0x22   : > { %650 = vst.msk [vmem:[#allocation2] sm:$0xff] %vm649_vm0, %v647_v0 }
  0x23   : > { %651 = vst.msk [vmem:[#allocation2 + $0x8] sm:$0xff] %vm649_vm0, %v648_v1 }
  0x24 PF: > { %v1462_v2 = vld [vmem:[%s1780_s18 + $0x10] sm:$0xf]  ;;  %v1530_v3 = vld [vmem:[%s1780_s18 + $0x14] sm:$0xf0]  ;;  %v1454_v4 = vld [vmem:[%s1780_s18] sm:$0xf]  ;;  %s2002_s27 = scalar_lea.vmem %s1975_s4, %s1773_s30  ;;  %s2003_s20 = scalar_lea.vmem %s1977_s6, %s1773_s30 }
  0x25   : > { %v1463_v5 = vor.u32 %v1530_v3, %v1462_v2  ;;  %v1528_v6 = vld [vmem:[%s1780_s18 + $0x4] sm:$0xf0]  ;;  %vm685_vm1 = vcmask 261120   ;;  %v1850_v11 = vld [vmem:[%s1785_s21] sm:$0x3]  ;;  %s1674_s5 = smov 96  }
  0x26   : > { %v1455_v8 = vor.u32 %v1528_v6, %v1454_v4  ;;  %v661_v13 = vperm.slane %v1850_v11, 0  ;;  %s1675_s21 = smov 64   ;;  %v1529_v24 = vld [vmem:[%s1780_s18 + $0x14] sm:$0xf]  ;;  %v1464_v25 = vld [vmem:[%s1780_s18 + $0x18] sm:$0xf0] }
  0x27   : > { %695 = vmatpush.bf16.msra.mxu0 %v1463_v5  ;;  %v1527_v26 = vld [vmem:[%s1780_s18 + $0x4] sm:$0xf]  ;;  %v1467_v27 = vor.u32 %v1529_v24, %v1464_v25  ;;  %v1456_v28 = vld [vmem:[%s1780_s18 + $0x8] sm:$0xf0]  ;;  %vm837_vm2 = vcmask 64512   ;;  %v662_v54 = vperm.slane %v1850_v11, 1 }
  0x28   : > { %v1459_v29 = vor.u32 %v1527_v26, %v1456_v28  ;;  %vm889_vm3 = vcmask 1043456   ;;  %p1518_p6 = scmp.ne.s32.totalorder %s1664_s25, 1 }
  0x29   : > { %v1842_v7 = vld [vmem:[#allocation2] sm:$0xff]  ;;  %709 = vmatpush.bf16.msra.mxu1 %v1467_v27 }
  0x2a   : > { %v1844_v9 = vld [vmem:[#allocation2 + $0x8] sm:$0xff] }
  0x2b   : > { %v654_v10 = vpack.c.bf16 %v1844_v9, %v1842_v7  ;;  %696 = vmatpush.bf16.msra.mxu0 %v1455_v8 }
  0x2d   : > { %710 = vmatpush.bf16.msra.mxu1 %v1459_v29 }
  0x2e   : > { %1468 = vmatmul.msk.bf16.vlgmr.msra.gmra.mxu0 %vm685_vm1, %v654_v10 }
  0x30   : > { %1469 = vmatmul.msk.bf16.vlgmr.msra.gmra.mxu1 %vm685_vm1, %v654_v10 }
  0xab   : > { %v698_v12 = vpop.f32.mrf.mxu0 }
  0xac   : > { %v699_v14 = vadd.f32 %v698_v12, %v661_v13 }
  0xad   : > { %v712_v53 = vpop.f32.mrf.mxu1 }
  0xae   : > { %v725_v17 = vpack.c.bf16 %v699_v14, %v699_v14  ;;  %v713_v56 = vadd.f32 %v712_v53, %v662_v54 }
  0xb0   : > { %v742_v22 = vunpack.c.l.b16 %v725_v17  ;;  %v737_v58 = vpack.c.bf16 %v713_v56, %v713_v56 }
  0xb2   : > { %v743_v23 = vpack.c.b16 %v742_v22, %v742_v22  ;;  %v891_v60 = vsel %vm889_vm3, %v737_v58, 0  ;;  %v1533_v58 = vld [vmem:[%s1790_s24 + $0x10] sm:$0xff] }
  0xb3   : > { %v700_v15 = vpop.f32.mrf.mxu0 }
  0xb4   : > { %v701_v16 = vadd.f32 %v700_v15, %v661_v13 }
  0xb5   : > { %v714_v55 = vpop.f32.mrf.mxu1 }
  0xb6   : > { %v726_v18 = vpack.c.bf16 %v701_v16, %v701_v16  ;;  %v1575_v19 = vpack.i.bf16 %v701_v16, %v699_v14  ;;  %v715_v57 = vadd.f32 %v714_v55, %v662_v54 }
  0xb8   : > { %1576 = vrot.lane.b32.xlu0 %v1575_v19, %s1674_s5  ;;  %v766_v20 = vunpack.c.l.b16 %v726_v18  ;;  %v738_v59 = vpack.c.bf16 %v715_v57, %v715_v57  ;;  %v1580_v16 = vpack.i.bf16 %v715_v57, %v713_v56  ;;  %v1534_v57 = vld [vmem:[%s1790_s24 + $0x18] sm:$0xff] }
  0xba   : > { %v767_v21 = vpack.c.b16 %v766_v20, %v766_v20  ;;  %v910_v61 = vsel %vm889_vm3, %v738_v59, 0 }
  0xbc   : > { %768 = vrot.lane.b32.xlu1 %v767_v21, %s1675_s21 }
  0xc0   : > { %744 = vrot.lane.b32.xlu0 %v743_v23, %s1675_s21 }
 0x12a   : > { %v1577_v30 = vpop.permute.xlu0 %1576 }
 0x12b   : > { %v1579_v31 = vunpack.i.h.bf16 %v1577_v30  ;;  %v1578_v32 = vunpack.i.l.bf16 %v1577_v30 }
 0x12d   : > { %v728_v33 = vpack.c.bf16 %v1579_v31, %v1579_v31  ;;  %v727_v34 = vpack.c.bf16 %v1578_v32, %v1578_v32 }
 0x12e   : > { %v769_v35 = vpop.permute.xlu1 %768 }
 0x12f   : > { %v790_v36 = vunpack.c.l.b16 %v727_v34  ;;  %v774_v37 = vsel %vm685_vm1, %v769_v35, 0  ;;  %v814_v38 = vunpack.c.l.b16 %v728_v33 }
 0x130   : > { %783 = vmatpush.bf16.xpose.msra.mxu3 %v774_v37 }
 0x131   : > { %v815_v39 = vpack.c.b16 %v814_v38, %v814_v38  ;;  %v791_v40 = vpack.c.b16 %v790_v36, %v790_v36 }
 0x132   : > { %v745_v41 = vpop.permute.xlu0 %744 }
 0x133   : > { %816 = vrot.lane.b32.xlu2 %v815_v39, %s1675_s21  ;;  %792 = vrot.lane.b32.xlu1 %v791_v40, %s1675_s21  ;;  %v750_v42 = vsel %vm685_vm1, %v745_v41, 0 }
 0x134   : > { %759 = vmatpush.bf16.xpose.msra.mxu2 %v750_v42 }
 0x137   : > { %1471 = vmatmul.msk.bf16.vlgmr.msra.gmra.mxu3 %vm685_vm1, %v726_v18 }
 0x138   : > { %919 = vmatpush.bf16.msrb.mxu3 %v910_v61 }
 0x13b   : > { %1470 = vmatmul.msk.bf16.vlgmr.msra.gmra.mxu2 %vm685_vm1, %v725_v17 }
 0x13c   : > { %900 = vmatpush.bf16.msrb.mxu2 %v891_v60 }
 0x140   : > { %995 = vmatpush.bf16.msra.mxu2 %v1534_v57 }
 0x144   : > { %996 = vmatpush.bf16.msra.mxu2 %v1533_v58 }
 0x18d   : > { %v817_v43 = vpop.permute.xlu2 %816 }
 0x18e   : > { %v822_v44 = vsel %vm685_vm1, %v817_v43, 0 }
 0x18f   : > { %831 = vmatpush.bf16.xpose.msrb.mxu1 %v822_v44 }
 0x196   : > { %1473 = vmatmul.msk.bf16.vlgmr.msrb.gmra.mxu1 %vm685_vm1, %v728_v33 }
 0x1a5   : > { %v793_v45 = vpop.permute.xlu1 %792 }
 0x1a6   : > { %v798_v46 = vsel %vm685_vm1, %v793_v45, 0 }
 0x1a7   : > { %807 = vmatpush.bf16.xpose.msrb.mxu0 %v798_v46  ;;  %v1532_v46 = vld [vmem:[%s1790_s24 + $0x8] sm:$0xff] }
 0x1a8   : > { %1024 = vmatpush.bf16.msra.mxu3 %v1532_v46 }
 0x1ae   : > { %1472 = vmatmul.msk.bf16.vlgmr.msrb.gmra.mxu0 %vm685_vm1, %v727_v34 }
 0x1ba   : > { %v785_v47 = vpop.f32.mrf.mxu3 }
 0x1bb   : > { %v841_v48 = vsel %vm837_vm2, %v785_v47, -inf }
 0x1bc   : > { %842 = vmax.xlane.f32.xlu0 %v841_v48  ;;  %v1531_v48 = vld [vmem:[%s1790_s24] sm:$0xff] }
 0x1bd   : > { %1025 = vmatpush.bf16.msra.mxu3 %v1531_v48 }
 0x1be   : > { %v761_v49 = vpop.f32.mrf.mxu2 }
 0x1bf   : > { %v838_v50 = vsel %vm837_vm2, %v761_v49, -inf }
 0x1c0   : > { %839 = vmax.xlane.f32.xlu2 %v838_v50 }
 0x1c2   : > { %v787_v51 = vpop.f32.mrf.mxu3 }
 0x1c6   : > { %v763_v52 = vpop.f32.mrf.mxu2 }
 0x213   : > { %v833_v62 = vpop.f32.mrf.mxu1 }
 0x214   : > { %v847_v63 = vsel %vm837_vm2, %v833_v62, -inf }
 0x215   : > { %848 = vmax.xlane.f32.xlu2 %v847_v63 }
 0x21b   : > { %v835_v0 = vpop.f32.mrf.mxu1 }
 0x22b   : > { %v809_v1 = vpop.f32.mrf.mxu0 }
 0x22c   : > { %v844_v2 = vsel %vm837_vm2, %v809_v1, -inf }
 0x22d   : > { %845 = vmax.xlane.f32.xlu1 %v844_v2 }
 0x22f   : > { %v843_v3 = vpop.xlane.xlu0 %842 }
 0x230   : > { %v851_v4 = vsub.f32 %v785_v47, %v843_v3 }
 0x232   : > { %v856_v5 = vmul.f32 1.442695, %v851_v4 }
 0x233   : > { %v811_v6 = vpop.f32.mrf.mxu0  ;;  %v840_v8 = vpop.xlane.xlu2 %839 }
 0x234   : > { %1592 = vpow2.f32 %v856_v5  ;;  %v850_v10 = vsub.f32 %v761_v49, %v840_v8 }
 0x236   : > { %v854_v11 = vmul.f32 1.442695, %v850_v10 }
 0x238   : > { %1594 = vpow2.f32 %v854_v11 }
 0x23a   : > { %v1593_v12 = vpop.eup %1592 }
 0x23b   : > { %v865_v13 = vsel %vm837_vm2, %v1593_v12, 0.0 }
 0x23c   : > { %866 = vadd.xlane.f32.xlu0 %v865_v13 }
 0x23e   : > { %v1595_v14 = vpop.eup %1594 }
 0x23f   : > { %v862_v15 = vsel %vm837_vm2, %v1595_v14, 0.0 }
 0x240   : > { %863 = vadd.xlane.f32.xlu2 %v862_v15  ;;  %v1676_v15 = vmov 32.0  }
 0x250   : > { %1581 = vrot.lane.b32.xlu0 %v1580_v16, %s1674_s5 }
 0x288   : > { %v849_v17 = vpop.xlane.xlu2 %848 }
 0x289   : > { %v853_v18 = vsub.f32 %v833_v62, %v849_v17 }
 0x28b   : > { %v860_v19 = vmul.f32 1.442695, %v853_v18 }
 0x28d   : > { %1596 = vpow2.f32 %v860_v19 }
 0x293   : > { %v1597_v20 = vpop.eup %1596 }
 0x294   : > { %v871_v21 = vsel %vm837_vm2, %v1597_v20, 0.0 }
 0x295   : > { %872 = vadd.xlane.f32.xlu2 %v871_v21 }
 0x2a0   : > { %v846_v22 = vpop.xlane.xlu1 %845 }
 0x2a1   : > { %v852_v23 = vsub.f32 %v809_v1, %v846_v22  ;;  %v1585_v1 = vld [vmem:[%s2002_s27] ss:$0 sm:$0xff] }
 0x2a3   : > { %v858_v24 = vmul.f32 1.442695, %v852_v23 }
 0x2a5   : > { %1598 = vpow2.f32 %v858_v24 }
 0x2ab   : > { %v1599_v25 = vpop.eup %1598 }
 0x2ac   : > { %v868_v26 = vsel %vm837_vm2, %v1599_v25, 0.0 }
 0x2ad   : > { %869 = vadd.xlane.f32.xlu1 %v868_v26 }
 0x2af   : > { %v867_v27 = vpop.xlane.xlu0 %866 }
 0x2b0   : > { %1600 = vrcp.f32 %v867_v27 }
 0x2b3   : > { %v864_v28 = vpop.xlane.xlu2 %863 }
 0x2b4   : > { %1602 = vrcp.f32 %v864_v28 }
 0x2b6   : > { %v1601_v29 = vpop.eup %1600 }
 0x2b7   : > { %v879_v30 = vmul.f32 %v1601_v29, %v1593_v12 }
 0x2b9   : > { %v883_v31 = vpack.c.bf16 %v879_v30, %v879_v30  ;;  %v1536_v30 = vld [vmem:[%s1804_s19 + $0x8] sm:$0xff] }
 0x2ba   : > { %v1603_v32 = vpop.eup %1602 }
 0x2bb   : > { %v878_v33 = vmul.f32 %v1603_v32, %v1595_v14  ;;  %1475 = vmatmul.msk.bf16.vlgmr.msrb.gmra.mxu3 %vm837_vm2, %v883_v31 }
 0x2bd   : > { %v882_v34 = vpack.c.bf16 %v878_v33, %v878_v33  ;;  %v1535_v33 = vld [vmem:[%s1804_s19] sm:$0xff] }
 0x2bf   : > { %1474 = vmatmul.msk.bf16.vlgmr.msrb.gmra.mxu2 %vm837_vm2, %v882_v34 }
 0x2c2   : > { %v1582_v35 = vpop.permute.xlu0 %1581 }
 0x2c3   : > { %v1584_v36 = vunpack.i.h.bf16 %v1582_v35  ;;  %v1583_v37 = vunpack.i.l.bf16 %v1582_v35 }
 0x2c5   : > { %v740_v38 = vpack.c.bf16 %v1584_v36, %v1584_v36  ;;  %v739_v39 = vpack.c.bf16 %v1583_v37, %v1583_v37 }
 0x2c7   : > { %v929_v40 = vsel %vm889_vm3, %v739_v39, 0  ;;  %v948_v41 = vsel %vm889_vm3, %v740_v38, 0 }
 0x2c8   : > { %938 = vmatpush.bf16.msra.mxu0 %v929_v40  ;;  %957 = vmatpush.bf16.msra.mxu1 %v948_v41 }
 0x2cc   : > { %1133 = vmatpush.bf16.msrb.mxu0 %v1536_v30 }
 0x2d0   : > { %1134 = vmatpush.bf16.msrb.mxu0 %v1535_v33 }
 0x308   : > { %v873_v42 = vpop.xlane.xlu2 %872 }
 0x309   : > { %1604 = vrcp.f32 %v873_v42 }
 0x30f   : > { %v1605_v43 = vpop.eup %1604 }
 0x310   : > { %v881_v44 = vmul.f32 %v1605_v43, %v1597_v20 }
 0x312   : > { %v885_v45 = vpack.c.bf16 %v881_v44, %v881_v44 }
 0x314   : > { %1477 = vmatmul.msk.bf16.vlgmr.msra.gmra.mxu1 %vm837_vm2, %v885_v45 }
 0x320   : > { %v870_v47 = vpop.xlane.xlu1 %869 }
 0x321   : > { %1606 = vrcp.f32 %v870_v47 }
 0x322   : > { %1608 = vrcp.f32 %v1676_v15 }
 0x327   : > { %v1607_v49 = vpop.eup %1606 }
 0x328   : > { %v880_v50 = vmul.f32 %v1607_v49, %v1599_v25  ;;  %v1609_v16 = vpop.eup %1608 }
 0x329   : > { %v1049_v17 = vmul.f32 32.0, %v1609_v16  ;;  %vm1053_vm4 = vweird.f32 %v1609_v16 }
 0x32a   : > { %v884_v51 = vpack.c.bf16 %v880_v50, %v880_v50  ;;  %v1586_v50 = vld [vmem:[%s631_s2] ss:$0 sm:$0xff] }
 0x32b   : > { %v1050_v18 = vsub.f32 1.0, %v1049_v17 }
 0x32c   : > { %1476 = vmatmul.msk.bf16.vlgmr.msra.gmra.mxu0 %vm837_vm2, %v884_v51 }
 0x32d   : > { %v1051_v19 = vmul.f32 %v1609_v16, %v1050_v18 }
 0x33e   : > { %v921_v52 = vpop.f32.mrf.mxu3 }
 0x342   : > { %v902_v53 = vpop.f32.mrf.mxu2 }
 0x343   : > { %v963_v54 = vpack.c.bf16 %v921_v52, %v902_v53 }
 0x345   : > { %1499 = vmatmul.msk.bf16.vlgmr.msra.gmra.mxu3 %vm685_vm1, %v963_v54  ;;  %v1587_v54 = vld [vmem:[%s634_s16] ss:$0 sm:$0xff] }
 0x346   : > { %v923_v55 = vpop.f32.mrf.mxu3 }
 0x34a   : > { %v904_v56 = vpop.f32.mrf.mxu2 }
 0x391   : > { %v959_v59 = vpop.f32.mrf.mxu1 }
 0x399   : > { %v961_v60 = vpop.f32.mrf.mxu1 }
 0x3a9   : > { %v940_v61 = vpop.f32.mrf.mxu0 }
 0x3aa   : > { %v968_v62 = vpack.c.bf16 %v959_v59, %v940_v61  ;;  %v1538_v61 = vld [vmem:[%s1809_s22 + $0x8] sm:$0xff] }
 0x3ab   : > { %1173 = vmatpush.bf16.msrb.mxu1 %v1538_v61 }
 0x3ac   : > { %1490 = vmatmul.msk.bf16.vlgmr.msra.gmra.mxu2 %vm685_vm1, %v968_v62  ;;  %v1537_v62 = vld [vmem:[%s1809_s22] sm:$0xff] }
 0x3af   : > { %1174 = vmatpush.bf16.msrb.mxu1 %v1537_v62 }
 0x3b1   : > { %v942_v63 = vpop.f32.mrf.mxu0 }
 0x3c8   : > { %v1027_v0 = vpop.f32.mrf.mxu3 }
 0x3d0   : > { %v1029_v8 = vpop.f32.mrf.mxu3 }
 0x42f   : > { %v998_v2 = vpop.f32.mrf.mxu2 }
 0x430   : > { %v1028_v3 = vadd.f32 %v1027_v0, %v998_v2  ;;  %v1588_v0 = vld [vmem:[%s2003_s20] ss:$0 sm:$0xff] }
 0x432   : > { %v1036_v4 = vadd.f32 %v1585_v1, %v1028_v3 }
 0x434   : > { %v1038_v5 = vadd.f32 %v1036_v4, %v1842_v7  ;;  %v1052_v7 = vadd.f32 %v1609_v16, %v1051_v19 }
 0x436   : > { %v1042_v6 = vsel %vm685_vm1, %v1038_v5, 0.0  ;;  %v1900_v20 = vsel %vm1053_vm4, %v1609_v16, %v1052_v7 }
 0x437   : > { %1043 = vadd.xlane.f32.xlu1 %v1042_v6  ;;  %v1000_v10 = vpop.f32.mrf.mxu2 }
 0x438   : > { %v1030_v11 = vadd.f32 %v1029_v8, %v1000_v10  ;;  %v1589_v8 = vld [vmem:[%s628_s28] ss:$0 sm:$0xff] }
 0x43a   : > { %v1037_v12 = vadd.f32 %v1585_v1, %v1030_v11 }
 0x43c   : > { %v1039_v13 = vadd.f32 %v1037_v12, %v1844_v9 }
 0x43e   : > { %v1045_v14 = vsel %vm685_vm1, %v1039_v13, 0.0 }
 0x43f   : > { %1046 = vadd.xlane.f32.xlu2 %v1045_v14 }
 0x4aa   : > { %v1044_v21 = vpop.xlane.xlu1 %1043 }
 0x4ab   : > { %v1055_v22 = vmul.f32 %v1900_v20, %v1044_v21 }
 0x4ad   : > { %v1057_v23 = vsub.f32 %v1038_v5, %v1055_v22 }
 0x4af   : > { %v1059_v9 = vmul.f32 %v1057_v23, %v1057_v23 }
 0x4b1   : > { %v1061_v24 = vsel %vm685_vm1, %v1059_v9, 0.0 }
 0x4b2   : > { %1062 = vadd.xlane.f32.xlu1 %v1061_v24  ;;  %v1047_v25 = vpop.xlane.xlu2 %1046 }
 0x4b3   : > { %v1056_v26 = vmul.f32 %v1900_v20, %v1047_v25 }
 0x4b5   : > { %v1058_v27 = vsub.f32 %v1039_v13, %v1056_v26 }
 0x4b7   : > { %v1060_v28 = vmul.f32 %v1058_v27, %v1058_v27 }
 0x4b9   : > { %v1064_v29 = vsel %vm685_vm1, %v1060_v28, 0.0 }
 0x4ba   : > { %1065 = vadd.xlane.f32.xlu2 %v1064_v29 }
 0x525   : > { %v1063_v31 = vpop.xlane.xlu1 %1062 }
 0x526   : > { %v1067_v32 = vmul.f32 %v1063_v31, %v1900_v20 }
 0x528   : > { %v1069_v34 = vadd.f32 1e-05, %v1067_v32 }
 0x52a   : > { %1610 = vrsqrt.f32 %v1069_v34  ;;  %vm1077_vm6 = vweird.f32 %v1069_v34 }
 0x52d   : > { %v1066_v35 = vpop.xlane.xlu2 %1065 }
 0x52e   : > { %v1068_v36 = vmul.f32 %v1066_v35, %v1900_v20 }
 0x530   : > { %v1611_v37 = vpop.eup %1610  ;;  %v1070_v38 = vadd.f32 1e-05, %v1068_v36 }
 0x531   : > { %v1072_v39 = vmul.f32 %v1611_v37, %v1069_v34  ;;  %vm1078_vm5 = vweird.f32 %v1611_v37 }
 0x532   : > { %1612 = vrsqrt.f32 %v1070_v38  ;;  %vm1079_vm7 = vmor %vm1077_vm6, %vm1078_vm5  ;;  %vm1087_vm9 = vweird.f32 %v1070_v38 }
 0x533   : > { %v1073_v40 = vmul.f32 %v1611_v37, %v1072_v39 }
 0x535   : > { %v1074_v41 = vmul.f32 0.5, %v1073_v40 }
 0x537   : > { %v1075_v42 = vsub.f32 1.5, %v1074_v41  ;;  %v1590_v41 = vld [vmem:[%s637_s3] ss:$0 sm:$0xff] }
 0x538   : > { %v1613_v43 = vpop.eup %1612 }
 0x539   : > { %v1076_v44 = vmul.f32 %v1611_v37, %v1075_v42  ;;  %v1082_v45 = vmul.f32 %v1613_v43, %v1070_v38  ;;  %vm1088_vm8 = vweird.f32 %v1613_v43 }
 0x53a   : > { %vm1089_vm10 = vmor %vm1087_vm9, %vm1088_vm8 }
 0x53b   : > { %v1083_v46 = vmul.f32 %v1613_v43, %v1082_v45  ;;  %v1080_v47 = vsel %vm1079_vm7, %v1611_v37, %v1076_v44 }
 0x53c   : > { %v1091_v51 = vmul.f32 %v1080_v47, %v1057_v23 }
 0x53d   : > { %v1084_v48 = vmul.f32 0.5, %v1083_v46 }
 0x53e   : > { %v1096_v55 = vmul.f32 %v1586_v50, %v1091_v51 }
 0x53f   : > { %v1085_v49 = vsub.f32 1.5, %v1084_v48 }
 0x540   : > { %v1101_v58 = vadd.f32 %v1587_v54, %v1096_v55 }
 0x541   : > { %v1086_v52 = vmul.f32 %v1613_v43, %v1085_v49 }
 0x543   : > { %v1090_v53 = vsel %vm1089_vm10, %v1613_v43, %v1086_v52  ;;  %v1591_v43 = vld [vmem:[%s640_s13] ss:$0 sm:$0xff] }
 0x544   : > { %v1092_v56 = vmul.f32 %v1090_v53, %v1058_v27 }
 0x546   : > { %v1097_v57 = vmul.f32 %v1586_v50, %v1092_v56 }
 0x548   : > { %v1102_v59 = vadd.f32 %v1587_v54, %v1097_v57 }
 0x54a   : > { %v1103_v60 = vpack.c.bf16 %v1102_v59, %v1101_v58 }
 0x54c   : > { %1508 = vmatmul.msk.bf16.vlgmr.msrb.gmra.mxu0 %vm685_vm1, %v1103_v60 }
 0x5c9   : > { %v1136_v63 = vpop.f32.mrf.mxu0 }
 0x5ca   : > { %v1137_v1 = vadd.f32 %v1588_v0, %v1136_v63 }
 0x5cc   : > { %v1141_v4 = vmax.f32 %v1137_v1, 0.0 }
 0x5d1   : > { %v1138_v2 = vpop.f32.mrf.mxu0 }
 0x5d2   : > { %v1139_v3 = vadd.f32 %v1588_v0, %v1138_v2 }
 0x5d4   : > { %v1142_v5 = vmax.f32 %v1139_v3, 0.0 }
 0x5d6   : > { %v1143_v6 = vpack.c.bf16 %v1142_v5, %v1141_v4 }
 0x5d8   : > { %1517 = vmatmul.msk.bf16.vlgmr.msrb.gmra.mxu1 %vm685_vm1, %v1143_v6 }
 0x655   : > { %v1176_v10 = vpop.f32.mrf.mxu1 }
 0x656   : > { %v1177_v11 = vadd.f32 %v1589_v8, %v1176_v10 }
 0x658   : > { %v1181_v12 = vadd.f32 %v1177_v11, %v1101_v58 }
 0x65a   : > { %v1185_v13 = vsel %vm685_vm1, %v1181_v12, 0.0 }
 0x65b   : > { %1186 = vadd.xlane.f32.xlu1 %v1185_v13 }
 0x65d   : > { %v1178_v14 = vpop.f32.mrf.mxu1 }
 0x65e   : > { %v1179_v15 = vadd.f32 %v1589_v8, %v1178_v14 }
 0x660   : > { %v1182_v16 = vadd.f32 %v1179_v15, %v1102_v59 }
 0x662   : > { %v1188_v17 = vsel %vm685_vm1, %v1182_v16, 0.0 }
 0x663   : > { %1189 = vadd.xlane.f32.xlu0 %v1188_v17 }
 0x6ce   : > { %v1187_v18 = vpop.xlane.xlu1 %1186 }
 0x6cf   : > { %v1191_v19 = vmul.f32 %v1187_v18, %v1900_v20 }
 0x6d1   : > { %v1193_v7 = vsub.f32 %v1181_v12, %v1191_v19 }
 0x6d3   : > { %v1195_v21 = vmul.f32 %v1193_v7, %v1193_v7 }
 0x6d5   : > { %v1197_v22 = vsel %vm685_vm1, %v1195_v21, 0.0 }
 0x6d6   : > { %v1190_v23 = vpop.xlane.xlu0 %1189  ;;  %1198 = vadd.xlane.f32.xlu2 %v1197_v22 }
 0x6d7   : > { %v1192_v9 = vmul.f32 %v1190_v23, %v1900_v20 }
 0x6d9   : > { %v1194_v24 = vsub.f32 %v1182_v16, %v1192_v9 }
 0x6db   : > { %v1196_v25 = vmul.f32 %v1194_v24, %v1194_v24 }
 0x6dd   : > { %v1200_v26 = vsel %vm685_vm1, %v1196_v25, 0.0 }
 0x6de   : > { %1201 = vadd.xlane.f32.xlu1 %v1200_v26 }
 0x749   : > { %v1199_v27 = vpop.xlane.xlu2 %1198 }
 0x74a   : > { %v1203_v28 = vmul.f32 %v1199_v27, %v1900_v20 }
 0x74c   : > { %v1205_v29 = vadd.f32 1e-05, %v1203_v28 }
 0x74e   : > { %1614 = vrsqrt.f32 %v1205_v29  ;;  %vm1213_vm12 = vweird.f32 %v1205_v29 }
 0x751   : > { %v1202_v30 = vpop.xlane.xlu1 %1201 }
 0x752   : > { %v1204_v31 = vmul.f32 %v1202_v30, %v1900_v20 }
 0x754   : > { %v1615_v32 = vpop.eup %1614  ;;  %v1206_v33 = vadd.f32 1e-05, %v1204_v31 }
 0x755   : > { %v1208_v34 = vmul.f32 %v1615_v32, %v1205_v29  ;;  %vm1214_vm11 = vweird.f32 %v1615_v32 }
 0x756   : > { %1616 = vrsqrt.f32 %v1206_v33  ;;  %vm1215_vm13 = vmor %vm1213_vm12, %vm1214_vm11  ;;  %vm1223_vm15 = vweird.f32 %v1206_v33 }
 0x757   : > { %v1209_v35 = vmul.f32 %v1615_v32, %v1208_v34 }
 0x759   : > { %v1210_v36 = vmul.f32 0.5, %v1209_v35 }
 0x75b   : > { %v1211_v37 = vsub.f32 1.5, %v1210_v36 }
 0x75c   : > { %v1617_v38 = vpop.eup %1616 }
 0x75d   : > { %v1212_v39 = vmul.f32 %v1615_v32, %v1211_v37  ;;  %v1218_v40 = vmul.f32 %v1617_v38, %v1206_v33  ;;  %vm1224_vm14 = vweird.f32 %v1617_v38 }
 0x75e   : > { %vm1225_vm0 = vmor %vm1223_vm15, %vm1224_vm14 }
 0x75f   : > { %v1216_v20 = vsel %vm1215_vm13, %v1615_v32, %v1212_v39  ;;  %v1219_v42 = vmul.f32 %v1617_v38, %v1218_v40 }
 0x760   : > { %v1227_v44 = vmul.f32 %v1216_v20, %v1193_v7 }
 0x761   : > { %v1220_v45 = vmul.f32 0.5, %v1219_v42 }
 0x762   : > { %v1232_v46 = vmul.f32 %v1590_v41, %v1227_v44 }
 0x763   : > { %v1221_v47 = vsub.f32 1.5, %v1220_v45 }
 0x764   : > { %v1237_v48 = vadd.f32 %v1591_v43, %v1232_v46 }
 0x765   : > { %v1222_v49 = vmul.f32 %v1617_v38, %v1221_v47 }
 0x766   : > { %1239 = vst.msk [vmem:[#allocation2] sm:$0xff] %vm685_vm1, %v1237_v48 }
 0x767   : > { %v1226_v50 = vsel %vm1225_vm0, %v1617_v38, %v1222_v49 }
 0x768   : > { %v1228_v51 = vmul.f32 %v1226_v50, %v1194_v24 }
 0x76a   : > { %v1233_v52 = vmul.f32 %v1590_v41, %v1228_v51  ;;  %1244 = sbr.rel (%p1518_p6) target bundleno = 1905 (0x771), region = 80 }
 0x76c   : > { %v1238_v53 = vadd.f32 %v1591_v43, %v1233_v52 }
 0x76e   : > { %1240 = vst.msk [vmem:[#allocation2 + $0x8] sm:$0xff] %vm685_vm1, %v1238_v53 }
 0x76f   : > { %1245 = vst.msk [vmem:[#allocation3] sm:$0xff] %vm685_vm1, %v1237_v48 }
 0x770   : > { %1246 = vst.msk [vmem:[#allocation3 + $0x8] sm:$0xff] %vm685_vm1, %v1238_v53 }
 0x771 PF: > { %s2004_s3 = sld [smem:[#allocation7_spill]]  ;;  %s1677_s0 = smov [#allocation3]  }
 0x772   : > { %s2006_s21 = sld [smem:[#allocation14_spill]]  ;;  %s1255_s27 = sshll.u32 %s1677_s0, 4  ;;  %s1256_s27 = int_to_ptr.vmem [resolvable:$true] %s1255_s27 }
 0x773   : > { %s1678_s24 = smov 128   ;;  %s1679_s19 = smov 8  }
 0x777   : > { %s2005_s30 = sadd.s32 4294967295, %s2004_s3  }
 0x778   : > { %p1543_p7 = scmp.eq.s32.totalorder %s2005_s30, 1  ;;  %s1257_s18 = sshll.u32 %s2006_s21, 4  ;;  %s1258_s18 = int_to_ptr.hbm [resolvable:$true] %s1257_s18 }
 0x77a   : > { %1540 = dma.vmem_to_hbm [thread:$0]  (%p1543_p7), %s1256_s27, 256, %s1258_s18, [#allocation4], %s1678_s24, %s1678_s24, %s1679_s19  }
 0x77b   : > { %1659 = dma.done.wait (%p1543_p7), [#allocation4], 256  }
 0x77c   : > { %1661 = vsyncadd (%p1543_p7), [#allocation4], 4294967040 }
 0x77d PF: > { %s2007_s25 = sld [smem:[#allocation7_spill]] }
 0x77e   : > { %s2009_s26 = sld [smem:[#allocation8_spill]] }
 0x783   : > { %s24_s27 = sadd.s32 1, %s2007_s25   ;;  %s2008_s25 = sld [smem:[#allocation6_spill]] }
 0x784   : > { %p21_p8 = scmp.ge.s32.totalorder %s24_s27, 4  }
 0x786   :  { %23 = sbr.rel (!%p21_p8) target bundleno = 9 (0x9), region = 145 }
 0x78b   :  { %1274 = vsyncpa [#allocation4], 1 }
 0x78c   :  { %1276 = vsyncpa [#allocation4 + $0x1], 1 }

</bundles_post_ra>
